<compile_context>
chip_gen: v7x
topology: tpu7x:2x2x1
jax: 0.10.0
libtpu: 0.0.40
codegen_flags: <defaults>
</compile_context>

<pallas_src>
import functools

import jax
import jax.numpy as jnp
import numpy as np
from jax.experimental import pallas as pl
from jax.experimental.pallas import tpu as pltpu


def _upconv_kernel(x_ref, w_ref, b_ref, o_ref):
    # x_ref: (TH*WG, K)      kh/kw-halo'd input patches for this row tile
    # w_ref: (K, lanes)      fused subpixel conv weights (constant index map -> VMEM resident)
    # b_ref: (1, lanes)      fused bias row
    # o_ref: (TH*WG, lanes)  lane-dense output tile (lanes % 128 == 0)
    o_ref[...] = (
        jnp.dot(x_ref[...], w_ref[...], preferred_element_type=jnp.float32)
        + b_ref[...]
    ).astype(o_ref.dtype)


def _pick_lane_group(W, Cout):
    # lanes = 4*G*Cout must be a multiple of 128 (lane-dense stores).  Prefer 256 lanes
    # to fill the 256-wide v6e/v7x MXU, then 128 (v5e native width).  Larger G also
    # widens the banded K (= 3*(G+2)*Cin), so don't go past what the MXU needs.
    for lanes in (256, 128):
        if lanes % (4 * Cout) == 0:
            g = lanes // (4 * Cout)
            if g >= 1 and W % g == 0:
                return g
    for g in range(1, W + 1):  # generic fallback (odd Cout etc.)
        if W % g == 0 and (4 * g * Cout) % 128 == 0:
            return g
    raise ValueError(f"cannot make 4*G*Cout a multiple of 128 for W={W}, Cout={Cout}")


def _pick_row_tile_h(H, WG, N, lanes):
    # Rows per grid step = TH*WG.  Cap so the f32 result tile stays within ~32 vregs
    # (avoid spill-bound regime), keep the block sublane-aligned, and keep >=2 grid
    # steps when N == 1 so v7x can shard the grid across its 2 TensorCores.
    max_rows = max(8, 32768 // lanes)
    divisors = [d for d in range(1, H + 1) if H % d == 0]
    feas = [d for d in divisors
            if d * WG <= max_rows and ((d * WG) % 8 == 0 or d == H)]
    th = max(feas) if feas else H  # whole-image rows are always a legal block
    if N == 1 and th == H and H > 1:
        smaller = [d for d in feas if d < H]
        if smaller:
            th = max(smaller)
    return th


def upconv_forward(x_nchw, weight_oihw, bias, kernel_size):
    """Forward of UpConv: UpsamplingNearest2d(2) -> Conv2d(3, padding=1) + bias (NCHW)."""
    N, Cin, H, W = x_nchw.shape
    Cout = weight_oihw.shape[0]
    assert kernel_size == 3, "wgan_gp UpConv path implemented for kernel_size=3"
    # TODO(synk): kernel_size=1 variant (upsample + 1x1 conv) not implemented here.
    dt = x_nchw.dtype

    G = _pick_lane_group(W, Cout)        # W pixels per lane group
    WG = W // G
    lanes = 4 * G * Cout                 # (a, o, q, b) output lanes
    assert lanes % 128 == 0, "output must be lane-dense (4*G*Cout % 128 == 0)"
    K = 3 * (G + 2) * Cin                # kh(3) x kw-halo(G+2) x Cin -> single-matmul K
    TH = _pick_row_tile_h(H, WG, N, lanes)
    row_tiles = H // TH

    # ---- one-time weight/bias fusion (tiny, plain JAX) ----
    # S[a, kh, i]: original 3x3 row tap i contributes to fused low-res row tap kh for
    # output subpixel phase a; the same matrix folds columns (b, t, j).
    f32 = jnp.float32
    S = jnp.array([[[1, 0, 0], [0, 1, 1], [0, 0, 0]],
                   [[0, 0, 0], [1, 1, 0], [0, 0, 1]]], dtype=f32)
    wf = jnp.einsum('aki,btj,ocij->ktcabo', S, S, weight_oihw.astype(f32))  # (3,3,Cin,2,2,Cout)
    # Band over the kw halo: output pixel q in a lane group reads halo positions j = q + t.
    jj = jnp.arange(G + 2)[:, None, None]
    qq = jnp.arange(G)[None, :, None]
    tt = jnp.arange(3)[None, None, :]
    sel = (jj == qq + tt).astype(f32)                                  # (G+2, G, 3)
    # K-row order (kh, j, c) matches the patch lanes; output lane order (a, o, q, b).
    w_flat = jnp.einsum('jqt,ktcabo->kjcaoqb', sel, wf)
    w_flat = w_flat.reshape(K, lanes).astype(dt)
    b_row = jnp.broadcast_to(bias.astype(dt)[None, :, None, None],
                             (2, Cout, G, 2)).reshape(1, lanes)

    # ---- patch build: NCHW -> NHWC, pad, W-halo grouping + kh halo; O(1) slice ops ----
    x = jnp.transpose(x_nchw, (0, 2, 3, 1))                            # (N, H, W, Cin)
    x_pad = jnp.pad(x, ((0, 0), (1, 1), (1, max(G - 1, 1)), (0, 0)))   # (N, H+2, W+pad, Cin)
    main = x_pad[:, :, :W, :].reshape(N, H + 2, WG, G, Cin)            # halo index j = 0..G-1
    halo = x_pad[:, :, G:G + W, :].reshape(N, H + 2, WG, G, Cin)[:, :, :, :2, :]  # j = G, G+1
    x_grp = jnp.concatenate([main, halo], axis=3)                      # (N, H+2, WG, G+2, Cin)
    x_patches = jnp.stack(
        [x_grp[:, 0:H], x_grp[:, 1:H + 1], x_grp[:, 2:H + 2]], axis=3)  # (N, H, WG, 3, G+2, Cin)
    x_patches = x_patches.reshape(N, H * WG, K)                        # rows=(p,g), K=(kh,j,c)

    out = pl.pallas_call(
        _upconv_kernel,
        out_shape=jax.ShapeDtypeStruct((N, H * WG, lanes), dt),
        grid_spec=pltpu.PrefetchScalarGridSpec(
            num_scalar_prefetch=0,
            grid=(N, row_tiles),
            in_specs=[
                # row tile of patches: exactly the rows this step writes (VMEM ~ TH, not H)
                pl.BlockSpec((None, TH * WG, K), lambda n, t: (n, t, 0)),
                # fused weights / bias: constant index maps -> stay VMEM resident across grid
                pl.BlockSpec((K, lanes), lambda n, t: (0, 0)),
                pl.BlockSpec((1, lanes), lambda n, t: (0, 0)),
            ],
            out_specs=pl.BlockSpec((None, TH * WG, lanes), lambda n, t: (n, t, 0)),
        ),
        compiler_params=pltpu.CompilerParams(
            dimension_semantics=("parallel", "parallel")),
    )(x_patches, w_flat, b_row)

    # ---- depth-to-space back to NCHW ----
    # TODO(synk): this transpose is one extra HBM pass over the 4x-sized output; removing
    # it entirely requires a channels-last consumer (NHWC) or an in-kernel channel-major
    # store (sub-128-lane writes).  The (a, o, q, b) lane order keeps a contiguous (q, b)
    # minor chunk so XLA moves 2*G-element runs instead of scalars.
    out = out.reshape(N, H, WG, 2, Cout, G, 2)        # (n, p, g, a, o, q, b)
    out = jnp.transpose(out, (0, 4, 1, 3, 2, 5, 6))   # (n, o, p, a, g, q, b)
    return out.reshape(N, Cout, 2 * H, 2 * W)


def upconv_reference(x_nchw, weight_oihw, bias, kernel_size):
    """Pure-JAX reference (mirrors PyTorch UpsamplingNearest2d + Conv2d)."""
    pad = (kernel_size - 1) // 2
    x_up = jnp.repeat(jnp.repeat(x_nchw, 2, axis=2), 2, axis=3)
    y = jax.lax.conv_general_dilated(
        x_up, weight_oihw, window_strides=(1, 1),
        padding=((pad, pad), (pad, pad)),
        dimension_numbers=("NCHW", "OIHW", "NCHW"))
    return y + bias.reshape(1, -1, 1, 1)


if __name__ == "__main__":
    # UpConv(in_channels=4, out_channels=8, kernel_size=3, bias=True)
    N, Cin, H, W = 2, 4, 16, 16
    Cout, ksz = 8, 3

    key = jax.random.PRNGKey(0)
    kx, kwt, kb = jax.random.split(key, 3)
    x = jax.random.normal(kx, (N, Cin, H, W), dtype=jnp.float32)
    fan_in = Cin * ksz * ksz
    weight = jax.random.normal(kwt, (Cout, Cin, ksz, ksz), dtype=jnp.float32) / np.sqrt(fan_in)
    bias = jax.random.normal(kb, (Cout,), dtype=jnp.float32) * 0.1

    fwd = jax.jit(functools.partial(upconv_forward, kernel_size=ksz))
    out = jax.block_until_ready(fwd(x, weight, bias))

    ref = upconv_reference(x, weight, bias, ksz)
    assert out.shape == (N, Cout, 2 * H, 2 * W), out.shape
    np.testing.assert_allclose(np.asarray(out), np.asarray(ref), atol=1e-4, rtol=1e-4)

    print("KERNEL_OK")
</pallas_src>

<mosaic_0001>
module attributes {stable_mosaic.version = 11 : i64} {
  func.func @_upconv_kernel(%arg0: i32, %arg1: i32, %arg2: memref<1x32x120xf32, #tpu.memory_space<vmem>>, %arg3: memref<120x256xf32, #tpu.memory_space<vmem>>, %arg4: memref<1x256xf32, #tpu.memory_space<vmem>>, %arg5: memref<1x32x256xf32, #tpu.memory_space<vmem>>) attributes {dimension_semantics = [#tpu.dimension_semantics<parallel>, #tpu.dimension_semantics<parallel>], iteration_bounds = array<i64: 2, 1>, scalar_prefetch = 0 : i64, scratch_operands = 0 : i64, tpu.core_type = #tpu.core_type<tc>, window_params = [{transform_indices = @transform_0, window_bounds = array<i64: 1, 32, 120>}, {pipeline_mode = #tpu.pipeline_mode<synchronous>, transform_indices = @transform_1, window_bounds = array<i64: 120, 256>}, {pipeline_mode = #tpu.pipeline_mode<synchronous>, transform_indices = @transform_2, window_bounds = array<i64: 1, 256>}, {transform_indices = @transform_3, window_bounds = array<i64: 1, 32, 256>}]} {
    %c0 = arith.constant 0 : index
    %c0_0 = arith.constant 0 : index
    %c0_1 = arith.constant 0 : index
    %0 = vector.load %arg2[%c0, %c0_0, %c0_1] : memref<1x32x120xf32, #tpu.memory_space<vmem>>, vector<1x32x120xf32>
    %1 = vector.shape_cast %0 : vector<1x32x120xf32> to vector<32x120xf32>
    %c0_2 = arith.constant 0 : index
    %c0_3 = arith.constant 0 : index
    %2 = vector.load %arg3[%c0_2, %c0_3] : memref<120x256xf32, #tpu.memory_space<vmem>>, vector<120x256xf32>
    %cst = arith.constant dense<0.000000e+00> : vector<32x256xf32>
    %3 = tpu.matmul %1, %2, %cst {dimension_numbers = #tpu.dot_dimension_numbers<[1], [0], [0], [1], [0, 0, 1, 1], [], []>} : vector<32x120xf32>, vector<120x256xf32>, vector<32x256xf32> -> vector<32x256xf32>
    %c0_4 = arith.constant 0 : index
    %c0_5 = arith.constant 0 : index
    %4 = vector.load %arg4[%c0_4, %c0_5] : memref<1x256xf32, #tpu.memory_space<vmem>>, vector<1x256xf32>
    %5 = vector.broadcast %4 : vector<1x256xf32> to vector<32x256xf32>
    %6 = arith.addf %3, %5 : vector<32x256xf32>
    %c0_6 = arith.constant 0 : index
    %c0_7 = arith.constant 0 : index
    %c0_8 = arith.constant 0 : index
    %7 = vector.load %arg5[%c0_6, %c0_7, %c0_8] : memref<1x32x256xf32, #tpu.memory_space<vmem>>, vector<1x32x256xf32>
    %8 = vector.shape_cast %7 : vector<1x32x256xf32> to vector<32x256xf32>
    %9 = vector.shape_cast %6 : vector<32x256xf32> to vector<1x32x256xf32>
    tpu.vector_store %arg5[%c0_6, %c0_7, %c0_8], %9 {strides = array<i32>} : memref<1x32x256xf32, #tpu.memory_space<vmem>>, vector<1x32x256xf32>,
    return
  }
  func.func @transform_0(%arg0: i32, %arg1: i32) -> (i32, i32, i32) {
    %c0_i32 = arith.constant 0 : i32
    %c0_i32_0 = arith.constant 0 : i32
    return %arg0, %arg1, %c0_i32 : i32, i32, i32
  }
  func.func @transform_1(%arg0: i32, %arg1: i32) -> (i32, i32) {
    %c0_i32 = arith.constant 0 : i32
    %c0_i32_0 = arith.constant 0 : i32
    %c0_i32_1 = arith.constant 0 : i32
    return %c0_i32, %c0_i32_0 : i32, i32
  }
  func.func @transform_2(%arg0: i32, %arg1: i32) -> (i32, i32) {
    %c0_i32 = arith.constant 0 : i32
    %c0_i32_0 = arith.constant 0 : i32
    %c0_i32_1 = arith.constant 0 : i32
    return %c0_i32, %c0_i32_0 : i32, i32
  }
  func.func @transform_3(%arg0: i32, %arg1: i32) -> (i32, i32, i32) {
    %c0_i32 = arith.constant 0 : i32
    %c0_i32_0 = arith.constant 0 : i32
    return %arg0, %arg1, %c0_i32 : i32, i32, i32
  }
}

</mosaic_0001>

<bundles_post_ra>
// kernel: upconv_forward.1
= control target key start
LH: loop header
LB: loop body
LE: loop exit
PB: predicated region body
PF: predicated region fallthrough
CT: control target
= control target key end

     0   :  { %s592_s12 = smov 0   ;;  %s594_s13 = smov 0   ;;  %s730_s0 = inlined_call_operand.vmem [shape: f32[2,32,120], index: 0, kind: input, shape index: {}]   ;;  %s731_s1 = inlined_call_operand.vmem [shape: f32[120,256], index: 1, kind: input, shape index: {}]   ;;  %s732_s2 = inlined_call_operand.vmem [shape: f32[1,256], index: 2, kind: input, shape index: {}]   ;;  %s733_s3 = inlined_call_operand.vmem [shape: f32[2,32,256], index: 3, kind: output, shape index: {}]  }
   0x1   :  { %s596_s14 = smov 0  }
   0x2 LB: > { %s25_s15 = sadd.s32 1, %s565_s13  ;;  %p465_p0 = scmp.ge.s32.totalorder %s569_s14, 1  ;;  %s569_s14 = sphi %s596_s14, %s13_s14   ;;  %s565_s13 = sphi %s594_s13, %s735_s13   ;;  %s561_s12 = sphi %s592_s12, %s734_s12  }
   0x3   : > { %p27_p1 = scmp.ge.s32.totalorder %s25_s15, 2  ;;  %p158_p2 = scmp.lt.s32.totalorder %s569_s14, 3 }
   0x5   : > { %s737_s15 = smov (%p27_p1, %s25_s15), 0  ;;  %p159_p3 = pnand %p465_p0, %p158_p2 }
   0x6   : > { %v217_v0 = vld [vmem:[%s731_s1 + $0x8] sm:$0xff] (!%p159_p3)  ;;  %v219_v1 = vld [vmem:[%s731_s1 + $0x18] sm:$0xff] (!%p159_p3)  ;;  %v216_v2 = vld [vmem:[%s731_s1] sm:$0xff] (!%p159_p3)  ;;  %v571_v7 = vmov (!%p159_p3), 0.0   ;;  %p192_p4 = scmp.lt.s32.totalorder (!%p159_p3), %s561_s12, 1  ;;  %vm258_vm0 = vcmask (!%p159_p3), 982016   ;;  %v248_v49 = vlaneseq (!%p159_p3) }
   0x7   : > { %162 = sbr.rel (%p159_p3) target bundleno = 259 (0x103), region = 32  ;;  %v478_v3 = vpack.c.bf16 (!%p159_p3), %v219_v1, %v217_v0  ;;  %v218_v4 = vld [vmem:[%s731_s1 + $0x10] sm:$0xff] (!%p159_p3)  ;;  %v221_v5 = vld [vmem:[%s731_s1 + $0x28] sm:$0xff] (!%p159_p3)  ;;  %v223_v6 = vld [vmem:[%s731_s1 + $0x38] sm:$0xff] (!%p159_p3)  ;;  %335 = vmatprep.mubr.f32.mxu0 (!%p159_p3), %v571_v7  ;;  %347 = vmatprep.mubr.f32.mxu1 (!%p159_p3), %v571_v7 }
   0x8   : > { %v480_v8 = vpack.c.bf16 (!%p159_p3), %v218_v4, %v216_v2  ;;  %v482_v9 = vpack.c.bf16 (!%p159_p3), %v223_v6, %v221_v5  ;;  %v220_v10 = vld [vmem:[%s731_s1 + $0x20] sm:$0xff] (!%p159_p3)  ;;  %v222_v11 = vld [vmem:[%s731_s1 + $0x30] sm:$0xff] (!%p159_p3)  ;;  %v225_v12 = vld [vmem:[%s731_s1 + $0x48] sm:$0xff] (!%p159_p3)  ;;  %v249_v50 = vshrl.u32 (!%p159_p3), %v248_v49, 7 }
   0x9   : > { %479 = vmatprep.subr.bf16.mxu0 (!%p159_p3), %v478_v3  ;;  %506 = vmatprep.subr.bf16.mxu1 (!%p159_p3), %v478_v3  ;;  %v227_v13 = vld [vmem:[%s731_s1 + $0x58] sm:$0xff] (!%p159_p3)  ;;  %v484_v14 = vpack.c.bf16 (!%p159_p3), %v222_v11, %v220_v10  ;;  %v224_v16 = vld [vmem:[%s731_s1 + $0x40] sm:$0xff] (!%p159_p3)  ;;  %v226_v17 = vld [vmem:[%s731_s1 + $0x50] sm:$0xff] (!%p159_p3) }
   0xa   : > { %481 = vmatpush1.bf16.msra.mxu0 (!%p159_p3), %v480_v8  ;;  %514 = vmatpush1.bf16.msra.mxu1 (!%p159_p3), %v480_v8  ;;  %v486_v15 = vpack.c.bf16 (!%p159_p3), %v227_v13, %v225_v12  ;;  %v229_v18 = vld [vmem:[%s731_s1 + $0x68] sm:$0xff] (!%p159_p3)  ;;  %v231_v19 = vld [vmem:[%s731_s1 + $0x78] sm:$0xff] (!%p159_p3)  ;;  %v488_v20 = vpack.c.bf16 (!%p159_p3), %v226_v17, %v224_v16  ;;  %v228_v22 = vld [vmem:[%s731_s1 + $0x60] sm:$0xff] (!%p159_p3)  ;;  %v250_v51 = vsub.s32 (!%p159_p3), 0, %v249_v50  ;;  %v254_v53 = vsub.s32 (!%p159_p3), 1, %v249_v50 }
   0xb   : > { %483 = vmatprep.subr.bf16.mxu0 (!%p159_p3), %v482_v9  ;;  %507 = vmatprep.subr.bf16.mxu1 (!%p159_p3), %v482_v9  ;;  %v490_v21 = vpack.c.bf16 (!%p159_p3), %v231_v19, %v229_v18  ;;  %v230_v23 = vld [vmem:[%s731_s1 + $0x70] sm:$0xff] (!%p159_p3)  ;;  %v233_v24 = vld [vmem:[%s731_s1 + $0x88] sm:$0xff] (!%p159_p3)  ;;  %v235_v25 = vld [vmem:[%s731_s1 + $0x98] sm:$0xff] (!%p159_p3) }
   0xc   : > { %v492_v26 = vpack.c.bf16 (!%p159_p3), %v230_v23, %v228_v22  ;;  %v494_v27 = vpack.c.bf16 (!%p159_p3), %v235_v25, %v233_v24  ;;  %v232_v28 = vld [vmem:[%s731_s1 + $0x80] sm:$0xff] (!%p159_p3)  ;;  %v234_v29 = vld [vmem:[%s731_s1 + $0x90] sm:$0xff] (!%p159_p3)  ;;  %v237_v30 = vld [vmem:[%s731_s1 + $0xa8] sm:$0xff] (!%p159_p3) }
   0xd   : > { %v239_v31 = vld [vmem:[%s731_s1 + $0xb8] sm:$0xff] (!%p159_p3)  ;;  %v496_v32 = vpack.c.bf16 (!%p159_p3), %v234_v29, %v232_v28  ;;  %v236_v34 = vld [vmem:[%s731_s1 + $0xa0] sm:$0xff] (!%p159_p3)  ;;  %v238_v35 = vld [vmem:[%s731_s1 + $0xb0] sm:$0xff] (!%p159_p3) }
   0xe   : > { %485 = vmatpush1.bf16.msra.mxu0 %v484_v14  ;;  %515 = vmatpush1.bf16.msra.mxu1 %v484_v14  ;;  %v498_v33 = vpack.c.bf16 %v239_v31, %v237_v30  ;;  %v241_v36 = vld [vmem:[%s731_s1 + $0xc8] sm:$0xff]  ;;  %v243_v37 = vld [vmem:[%s731_s1 + $0xd8] sm:$0xff]  ;;  %v500_v38 = vpack.c.bf16 %v238_v35, %v236_v34  ;;  %s739_s12 = smov (!%p192_p4, %s561_s12), 1  ;;  %v240_v40 = vld [vmem:[%s731_s1 + $0xc0] sm:$0xff] }
   0xf   : > { %487 = vmatprep.subr.bf16.mxu0 %v486_v15  ;;  %508 = vmatprep.subr.bf16.mxu1 %v486_v15  ;;  %v502_v39 = vpack.c.bf16 %v243_v37, %v241_v36  ;;  %v242_v41 = vld [vmem:[%s731_s1 + $0xd0] sm:$0xff]  ;;  %s476_s26 = sshll.u32 %s739_s12, 5  ;;  %v245_v43 = vld [vmem:[%s731_s1 + $0xe8] sm:$0xff]  ;;  %v244_v44 = vld [vmem:[%s731_s1 + $0xe0] sm:$0xff]  ;;  %s477_s9 = sshll.u32 %s739_s12, 6 }
  0x10   : > { %v504_v42 = vpack.c.bf16 %v242_v41, %v240_v40  ;;  %s199_s4 = scalar_lea.vmem %s730_s0, %s476_s26  ;;  %v246_v52 = vld [vmem:[%s732_s2] sm:$0x3]  ;;  %s210_s16 = scalar_lea.vmem %s733_s3, %s477_s9 }
  0x11   : > { %v212_v45 = vld [vmem:[%s199_s4] sm:$0xff]  ;;  %v214_v46 = vld [vmem:[%s199_s4 + $0x10] sm:$0xff]  ;;  %v213_v47 = vld [vmem:[%s199_s4 + $0x8] sm:$0xff]  ;;  %v251_v54 = vrot.slane %v246_v52, %v250_v51  ;;  %v255_v55 = vrot.slane %v246_v52, %v254_v53 }
  0x12   : > { %489 = vmatpush1.bf16.msra.mxu0 %v488_v20  ;;  %516 = vmatpush1.bf16.msra.mxu1 %v488_v20  ;;  %v215_v48 = vld [vmem:[%s199_s4 + $0x18] sm:$0xff] }
  0x13   : > { %491 = vmatprep.subr.bf16.mxu0 %v490_v21  ;;  %509 = vmatprep.subr.bf16.mxu1 %v490_v21 }
  0x16   : > { %493 = vmatpush1.bf16.msra.mxu0 %v492_v26  ;;  %517 = vmatpush1.bf16.msra.mxu1 %v492_v26 }
  0x17   : > { %495 = vmatprep.subr.bf16.mxu0 %v494_v27  ;;  %510 = vmatprep.subr.bf16.mxu1 %v494_v27 }
  0x1a   : > { %497 = vmatpush1.bf16.msra.mxu0 %v496_v32  ;;  %518 = vmatpush1.bf16.msra.mxu1 %v496_v32 }
  0x1b   : > { %499 = vmatprep.subr.bf16.mxu0 %v498_v33  ;;  %511 = vmatprep.subr.bf16.mxu1 %v498_v33 }
  0x1e   : > { %501 = vmatpush1.bf16.msra.mxu0 %v500_v38  ;;  %519 = vmatpush1.bf16.msra.mxu1 %v500_v38 }
  0x1f   : > { %503 = vmatprep.subr.bf16.mxu0 %v502_v39  ;;  %512 = vmatprep.subr.bf16.mxu1 %v502_v39 }
  0x22   : > { %505 = vmatpush1.bf16.msra.mxu0 %v504_v42  ;;  %520 = vmatpush1.bf16.msra.mxu1 %v504_v42 }
  0x23   : > { %299 = vmatprep.subr.mxu0 %v245_v43  ;;  %513 = vmatprep.subr.mxu1 %v245_v43 }
  0x26   : > { %300 = vmatpush1.msra.mxu0 %v244_v44  ;;  %521 = vmatpush1.msra.mxu1 %v244_v44 }
  0x27   : > { %470 = vmatmul.mubr.msk.f32.vlgmr.msra.gmra.mrb[0].mxu0 %vm258_vm0, %v212_v45  ;;  %472 = vmatmul.mubr.msk.f32.vlgmr.msra.gmra.mrb[0].mxu1 %vm258_vm0, %v214_v46 }
  0x28   : > { %341 = vmatprep.mubr.f32.mxu0 %v571_v7  ;;  %353 = vmatprep.mubr.f32.mxu1 %v571_v7 }
  0x2b   : > { %471 = vmatmul.mubr.msk.f32.gmra.mrb[2].mxu0 %vm258_vm0, %v213_v47  ;;  %473 = vmatmul.mubr.msk.f32.gmra.mrb[2].mxu1 %vm258_vm0, %v215_v48 }
  0xfa   : > { %v337_v56 = vpop.f32.mrb[0].mxu0  ;;  %v349_v57 = vpop.f32.mrb[0].mxu1 }
  0xfb   : > { %v338_v58 = vadd.f32 %v337_v56, %v251_v54  ;;  %v350_v59 = vadd.f32 %v349_v57, %v251_v54  ;;  %v339_v60 = vpop.f32.mrb[1].mxu0  ;;  %v351_v61 = vpop.f32.mrb[1].mxu1 }
  0xfc   : > { %v340_v62 = vadd.f32 %v339_v60, %v255_v55  ;;  %v352_v63 = vadd.f32 %v351_v61, %v255_v55 }
  0xfd   : > { %360 = vst [vmem:[%s210_s16] sm:$0xff] %v338_v58  ;;  %364 = vst [vmem:[%s210_s16 + $0x20] sm:$0xff] %v350_v59 }
  0xfe   : > { %361 = vst [vmem:[%s210_s16 + $0x8] sm:$0xff] %v340_v62  ;;  %365 = vst [vmem:[%s210_s16 + $0x28] sm:$0xff] %v352_v63  ;;  %v343_v0 = vpop.f32.mrb[2].mxu0  ;;  %v355_v1 = vpop.f32.mrb[2].mxu1 }
  0xff   : > { %v344_v2 = vadd.f32 %v343_v0, %v251_v54  ;;  %v356_v3 = vadd.f32 %v355_v1, %v251_v54  ;;  %v345_v4 = vpop.f32.mrb[3].mxu0  ;;  %v357_v5 = vpop.f32.mrb[3].mxu1 }
 0x100   : > { %v346_v6 = vadd.f32 %v345_v4, %v255_v55  ;;  %v358_v7 = vadd.f32 %v357_v5, %v255_v55 }
 0x101   : > { %362 = vst [vmem:[%s210_s16 + $0x10] sm:$0xff] %v344_v2  ;;  %366 = vst [vmem:[%s210_s16 + $0x30] sm:$0xff] %v356_v3 }
 0x102   : > { %363 = vst [vmem:[%s210_s16 + $0x18] sm:$0xff] %v346_v6  ;;  %367 = vst [vmem:[%s210_s16 + $0x38] sm:$0xff] %v358_v7 }
 0x103 PF: > { %s13_s14 = sadd.s32 1, %s569_s14   ;;  %s734_s12 = smov %s565_s13 }
 0x104   : > { %p10_p5 = scmp.ge.s32.totalorder %s13_s14, 4   ;;  %s735_s13 = smov %s737_s15 }
 0x106   :  { %12 = sbr.rel (!%p10_p5) target bundleno = 2 (0x2), region = 62 }

</bundles_post_ra>
